<compile_context>
chip_gen: v7x
topology: tpu7x:2x2x1
jax: 0.10.0
libtpu: 0.0.40
codegen_flags: <defaults>
</compile_context>

<pallas_src>
import jax
import jax.numpy as jnp
import numpy as np
from jax.experimental import pallas as pl
from jax.experimental.pallas import tpu as pltpu

# ----------------------------- model hyper-params (synthetic, small) -----------------------------
GAT_LAYERS = 4
N_HEADS = 1              # conv_type == 'gcn'
HIDDEN_DIM = 4           # self.HIDDEN_DIM
GCN_OUT = HIDDEN_DIM * N_HEADS
NODE_EMBED_SIZE = 8      # utils.NODE_EMBED_SIZE (synthetic)
N_NODES = 16             # map.get_graph_size() (synthetic ring graph)
OBS_DIM = 32             # int(np.product(obs_space.shape)) (synthetic)
NUM_OUTPUTS = 8          # action_space.n == num_outputs
HIDDEN_SIZE = 32         # kwargs['hidden_size']
BATCH = 2

PAD = 128                                        # lane-padded width for all folded weights
X0_FLAT = N_NODES * NODE_EMBED_SIZE              # 128 (internal to the fold only)
ROW_W1 = 0                                       # rows of the packed weight slab
ROW_W2 = OBS_DIM                                 # 32
ROW_W3 = OBS_DIM + PAD                           # 160
W_SLAB_ROWS = OBS_DIM + 2 * PAD                  # 288
SUBLANE = 8                                      # batch is padded to a multiple of this


# ----------------------------------------- Pallas kernel -----------------------------------------
def gnn_policy_kernel(obs_ref, w_ref, b_ref, out_ref):
    # Packed, pre-folded, 128-lane-padded parameters (see fold_params):
    #   w[ROW_W1:ROW_W2]  W1: [obs -> hidden1]; cols :32 = (embed+GCN^4+pool+agg)@wh1f + wh1o
    #   w[ROW_W2:ROW_W3]  W2: [hidden1 -> hidden2]
    #   w[ROW_W3:      ]  W3: [hidden2 -> (feats | logits)]  (identity || wlog)
    #   b rows 0/1/2 are the matching 128-lane-padded biases.
    # Weight reads are deferred to just before each dot so the W2/W3 vector loads can
    # overlap the EUP tanh of the previous stage (serially dependent 3-stage chain).
    obs = obs_ref[...]                                                                # [BP, 32]

    w1 = w_ref[ROW_W1:ROW_W2, :]                                                      # [32, 128]
    z = jnp.tanh(jnp.dot(obs, w1, preferred_element_type=jnp.float32) + b_ref[0:1, :])  # [BP,128]

    w2 = w_ref[ROW_W2:ROW_W3, :]                                                      # [128, 128]
    h = jnp.tanh(jnp.dot(z, w2, preferred_element_type=jnp.float32) + b_ref[1:2, :])  # [BP, 128]

    w3 = w_ref[ROW_W3:W_SLAB_ROWS, :]                                                 # [128, 128]
    out_ref[...] = jnp.dot(h, w3, preferred_element_type=jnp.float32) + b_ref[2:3, :]  # [BP, 128]


def gnn_policy_forward(obs, w_slab, b_slab):
    # Layout plumbing only: pad batch to a sublane multiple so the output slab gets
    # unmasked vst / full MXU result-row occupancy; slice the real rows afterwards.
    batch = obs.shape[0]
    bp = max(SUBLANE, ((batch + SUBLANE - 1) // SUBLANE) * SUBLANE)
    obs_p = obs if bp == batch else jnp.zeros((bp, OBS_DIM), obs.dtype).at[:batch].set(obs)
    # TODO(synk): for large batch, add grid=(BP//tb,) with dimension_semantics=("parallel",)
    # and a constant-indexed weight BlockSpec (lambda i: (0, 0)) so the 144 KB slab stays
    # VMEM-resident across grid steps (and shards across v7x's two TensorCores).
    out = pl.pallas_call(
        gnn_policy_kernel,
        out_shape=jax.ShapeDtypeStruct((bp, PAD), jnp.float32),
        in_specs=[pl.BlockSpec(memory_space=pltpu.MemorySpace.VMEM)] * 3,
        out_specs=pl.BlockSpec(memory_space=pltpu.MemorySpace.VMEM),
    )(obs_p, w_slab, b_slab)
    feats = out[:batch, :HIDDEN_SIZE]                                   # [B, 32]
    logits = out[:batch, HIDDEN_SIZE:HIDDEN_SIZE + NUM_OUTPUTS]         # [B, 8]
    return logits, feats


# -------------------------------------- glue / param setup ---------------------------------------
def build_normalized_adjacency(n_nodes):
    # synthetic ring graph standing in for map.g_acs.adj (bidirectional edges)
    A = np.zeros((n_nodes, n_nodes), dtype=np.float32)
    for i in range(n_nodes):
        j = (i + 1) % n_nodes
        A[i, j] = 1.0
        A[j, i] = 1.0
    A = A + np.eye(n_nodes, dtype=np.float32)              # add self loops (GCN norm)
    deg = A.sum(axis=1)
    d_inv_sqrt = 1.0 / np.sqrt(deg)
    A_hat = (A * d_inv_sqrt[:, None]) * d_inv_sqrt[None, :]
    return jnp.asarray(A_hat, dtype=jnp.float32)


def init_params(key):
    def nrm(k, shape, scale=0.1):
        return scale * jax.random.normal(k, shape, dtype=jnp.float32)

    keys = jax.random.split(key, 32)
    ki = iter(keys)
    params = []
    # 4 GCN layers: in = NODE_EMBED_SIZE for layer 0, else GCN_OUT; out = GCN_OUT
    for i in range(GAT_LAYERS):
        fin = NODE_EMBED_SIZE if i == 0 else GCN_OUT
        params.append(nrm(next(ki), (fin, GCN_OUT)))
        params.append(nrm(next(ki), (1, GCN_OUT)))
    # aggregator linear: GCN_OUT -> NUM_OUTPUTS
    params.append(nrm(next(ki), (GCN_OUT, NUM_OUTPUTS)))
    params.append(nrm(next(ki), (1, NUM_OUTPUTS)))
    # _hiddens layer 1 (input = NUM_OUTPUTS + OBS_DIM, kept split as wh1f / wh1o)
    params.append(nrm(next(ki), (NUM_OUTPUTS, HIDDEN_SIZE)))
    params.append(nrm(next(ki), (OBS_DIM, HIDDEN_SIZE)))
    params.append(nrm(next(ki), (1, HIDDEN_SIZE)))
    # _hiddens layer 2
    params.append(nrm(next(ki), (HIDDEN_SIZE, HIDDEN_SIZE)))
    params.append(nrm(next(ki), (1, HIDDEN_SIZE)))
    # _logits
    params.append(nrm(next(ki), (HIDDEN_SIZE, NUM_OUTPUTS)))
    params.append(nrm(next(ki), (1, NUM_OUTPUTS)))
    return tuple(params)


def fold_params(params, adj_norm, embed_matrix):
    """Fold embed + GCN chain + mean-pool + aggregator + hiddens + logits into 3 padded blocks.

    EXACT (done in float64) because layernorm=False and there is no inter-layer activation;
    gate the fold on those flags before using with a production config.
    The embed fold additionally requires efficient_embed_obs_in_map to be linear in obs
    (true for the synthetic stand-in used here).
    """
    p = [np.asarray(t, dtype=np.float64) for t in params]
    (wg0, bg0, wg1, bg1, wg2, bg2, wg3, bg3,
     wagg, bagg, wh1f, wh1o, bh1, wh2, bh2, wlog, blog) = p
    A = np.asarray(adj_norm, dtype=np.float64)
    E_flat = np.asarray(embed_matrix, dtype=np.float64).reshape(OBS_DIM, X0_FLAT)  # [32, 128]
    n = A.shape[0]
    Ws = [wg0, wg1, wg2, wg3]
    Bs = [bg0, bg1, bg2, bg3]

    # x4 = A^4 @ x0 @ (W0 W1 W2 W3) + B_fold  (bias b_l propagated through layers l+1..3)
    W_chain = Ws[0] @ Ws[1] @ Ws[2] @ Ws[3]                      # [F, GCN_OUT]
    B_fold = np.zeros((n, GCN_OUT), dtype=np.float64)
    for l in range(GAT_LAYERS):
        term = np.ones((n, 1)) @ Bs[l]                           # broadcast bias over nodes
        for j in range(l + 1, GAT_LAYERS):
            term = A @ (term @ Ws[j])
        B_fold = B_fold + term

    A4 = np.linalg.matrix_power(A, GAT_LAYERS)
    m = (np.ones((1, n)) / n) @ A4                               # mean-pool absorbed: [1, N]
    pooled_bias = (np.ones((1, n)) / n) @ B_fold                 # [1, GCN_OUT]

    # aggregator fold: feat = (m @ x0) @ (W_chain @ wagg) + (pooled_bias @ wagg + bagg)
    Wga = W_chain @ wagg                                         # [F, NUM_OUTPUTS]
    b_feat = pooled_bias @ wagg + bagg                           # [1, NUM_OUTPUTS]

    # rewrite (m @ x0) @ Wga as x0_flat @ W_feat  (x0_flat = x0.reshape(B, N*F), row-major)
    W_feat = np.einsum('n,fo->nfo', m[0], Wga).reshape(X0_FLAT, NUM_OUTPUTS)

    # embed fold: x0_flat = obs @ E_flat, so the graph half of hidden layer 1 becomes
    #   obs @ (E_flat @ W_feat @ wh1f); combined with the obs half (wh1o):
    W1 = np.zeros((OBS_DIM, PAD), dtype=np.float64)
    W1[:, :HIDDEN_SIZE] = E_flat @ (W_feat @ wh1f) + wh1o
    b1 = np.zeros((1, PAD), dtype=np.float64)
    b1[:, :HIDDEN_SIZE] = b_feat @ wh1f + bh1

    W2 = np.zeros((PAD, PAD), dtype=np.float64)
    W2[:HIDDEN_SIZE, :HIDDEN_SIZE] = wh2
    b2 = np.zeros((1, PAD), dtype=np.float64)
    b2[:, :HIDDEN_SIZE] = bh2

    # output head writes [feats | logits | 0...] in one lane-dense slab:  h @ [I | wlog | 0]
    W3 = np.zeros((PAD, PAD), dtype=np.float64)
    W3[:HIDDEN_SIZE, :HIDDEN_SIZE] = np.eye(HIDDEN_SIZE)
    W3[:HIDDEN_SIZE, HIDDEN_SIZE:HIDDEN_SIZE + NUM_OUTPUTS] = wlog
    b3 = np.zeros((1, PAD), dtype=np.float64)
    b3[:, HIDDEN_SIZE:HIDDEN_SIZE + NUM_OUTPUTS] = blog

    # TODO(synk): optional bf16 weight/activation cast (halves DMA, native MXU on v6e/v7x);
    # kept f32 here to preserve the 1e-4 check against the f64 fold / f32 reference.
    w_slab = np.concatenate([W1, W2, W3], axis=0).astype(np.float32)     # [288, 128]
    b_slab = np.zeros((SUBLANE, PAD), dtype=np.float32)                  # sublane-padded biases
    b_slab[0, :] = b1[0]
    b_slab[1, :] = b2[0]
    b_slab[2, :] = b3[0]
    return jnp.asarray(w_slab), jnp.asarray(b_slab)


def embed_obs_in_map(obs, embed_matrix):
    # TODO(synk): utils.efficient_embed_obs_in_map is external; replaced by a deterministic
    # linear scatter of the flat obs into per-node embedding channels.  Used only by the
    # pure-JAX reference; the kernel has this fold baked into W1.
    return jnp.einsum('bo,onf->bnf', obs, embed_matrix)


def reference_forward(x0, A, obs, params):
    (wg0, bg0, wg1, bg1, wg2, bg2, wg3, bg3,
     wagg, bagg, wh1f, wh1o, bh1, wh2, bh2, wlog, blog) = params
    with jax.default_matmul_precision("highest"):
        x = x0
        for w, b in ((wg0, bg0), (wg1, bg1), (wg2, bg2), (wg3, bg3)):
            x = jnp.einsum('nm,bmf->bnf', A, jnp.einsum('bnf,fg->bng', x, w)) + b[None, :, :]
        pooled = jnp.mean(x, axis=1)
        feat = pooled @ wagg + bagg
        h = jnp.tanh(feat @ wh1f + obs @ wh1o + bh1)
        h = jnp.tanh(h @ wh2 + bh2)
        logits = h @ wlog + blog
    return logits, h


# ------------------------------------------------ main -------------------------------------------
if __name__ == "__main__":
    key = jax.random.PRNGKey(0)
    k_obs, k_emb, k_par = jax.random.split(key, 3)

    obs = jax.random.normal(k_obs, (BATCH, OBS_DIM), dtype=jnp.float32)
    embed_matrix = 0.1 * jax.random.normal(
        k_emb, (OBS_DIM, N_NODES, NODE_EMBED_SIZE), dtype=jnp.float32)
    params = init_params(k_par)
    adj_norm = build_normalized_adjacency(N_NODES)

    # exact algebraic fold (done once, offline); kernel consumes raw obs
    w_slab, b_slab = fold_params(params, adj_norm, embed_matrix)

    logits, feats = gnn_policy_forward(obs, w_slab, b_slab)
    logits = jax.block_until_ready(logits)
    feats = jax.block_until_ready(feats)

    x0 = embed_obs_in_map(obs, embed_matrix)               # reference-only
    ref_logits, ref_feats = reference_forward(x0, adj_norm, obs, params)
    assert logits.shape == (BATCH, NUM_OUTPUTS)
    assert feats.shape == (BATCH, HIDDEN_SIZE)
    np.testing.assert_allclose(np.asarray(logits), np.asarray(ref_logits), atol=1e-4, rtol=1e-4)
    np.testing.assert_allclose(np.asarray(feats), np.asarray(ref_feats), atol=1e-4, rtol=1e-4)

    print("KERNEL_OK")
</pallas_src>

<mosaic_0001>
module attributes {stable_mosaic.version = 11 : i64} {
  func.func @gnn_policy_kernel(%arg0: memref<8x32xf32, #tpu.memory_space<vmem>>, %arg1: memref<288x128xf32, #tpu.memory_space<vmem>>, %arg2: memref<8x128xf32, #tpu.memory_space<vmem>>, %arg3: memref<8x128xf32, #tpu.memory_space<vmem>>) attributes {dimension_semantics = [], scalar_prefetch = 0 : i64, scratch_operands = 0 : i64, tpu.core_type = #tpu.core_type<tc>} {
    %c0 = arith.constant 0 : index
    %c0_0 = arith.constant 0 : index
    %0 = vector.load %arg0[%c0, %c0_0] : memref<8x32xf32, #tpu.memory_space<vmem>>, vector<8x32xf32>
    %c0_1 = arith.constant 0 : index
    %c0_2 = arith.constant 0 : index
    %1 = vector.load %arg1[%c0_1, %c0_2] : memref<288x128xf32, #tpu.memory_space<vmem>>, vector<32x128xf32>
    %cst = arith.constant dense<0.000000e+00> : vector<8x128xf32>
    %2 = tpu.matmul %0, %1, %cst {dimension_numbers = #tpu.dot_dimension_numbers<[1], [0], [0], [1], [0, 0, 1, 1], [], []>} : vector<8x32xf32>, vector<32x128xf32>, vector<8x128xf32> -> vector<8x128xf32>
    %c0_3 = arith.constant 0 : index
    %c0_4 = arith.constant 0 : index
    %3 = vector.load %arg2[%c0_3, %c0_4] : memref<8x128xf32, #tpu.memory_space<vmem>>, vector<1x128xf32>
    %4 = vector.broadcast %3 : vector<1x128xf32> to vector<8x128xf32>
    %5 = arith.addf %2, %4 : vector<8x128xf32>
    %6 = math.tanh %5 : vector<8x128xf32>
    %c32 = arith.constant 32 : index
    %c0_5 = arith.constant 0 : index
    %7 = vector.load %arg1[%c32, %c0_5] : memref<288x128xf32, #tpu.memory_space<vmem>>, vector<128x128xf32>
    %cst_6 = arith.constant dense<0.000000e+00> : vector<8x128xf32>
    %8 = tpu.matmul %6, %7, %cst_6 {dimension_numbers = #tpu.dot_dimension_numbers<[1], [0], [0], [1], [0, 0, 1, 1], [], []>} : vector<8x128xf32>, vector<128x128xf32>, vector<8x128xf32> -> vector<8x128xf32>
    %c1 = arith.constant 1 : index
    %c0_7 = arith.constant 0 : index
    %9 = vector.load %arg2[%c1, %c0_7] : memref<8x128xf32, #tpu.memory_space<vmem>>, vector<1x128xf32>
    %10 = vector.broadcast %9 : vector<1x128xf32> to vector<8x128xf32>
    %11 = arith.addf %8, %10 : vector<8x128xf32>
    %12 = math.tanh %11 : vector<8x128xf32>
    %c160 = arith.constant 160 : index
    %c0_8 = arith.constant 0 : index
    %13 = vector.load %arg1[%c160, %c0_8] : memref<288x128xf32, #tpu.memory_space<vmem>>, vector<128x128xf32>
    %cst_9 = arith.constant dense<0.000000e+00> : vector<8x128xf32>
    %14 = tpu.matmul %12, %13, %cst_9 {dimension_numbers = #tpu.dot_dimension_numbers<[1], [0], [0], [1], [0, 0, 1, 1], [], []>} : vector<8x128xf32>, vector<128x128xf32>, vector<8x128xf32> -> vector<8x128xf32>
    %c2 = arith.constant 2 : index
    %c0_10 = arith.constant 0 : index
    %15 = vector.load %arg2[%c2, %c0_10] : memref<8x128xf32, #tpu.memory_space<vmem>>, vector<1x128xf32>
    %16 = vector.broadcast %15 : vector<1x128xf32> to vector<8x128xf32>
    %17 = arith.addf %14, %16 : vector<8x128xf32>
    %c0_11 = arith.constant 0 : index
    %c0_12 = arith.constant 0 : index
    %18 = vector.load %arg3[%c0_11, %c0_12] : memref<8x128xf32, #tpu.memory_space<vmem>>, vector<8x128xf32>
    tpu.vector_store %arg3[%c0_11, %c0_12], %17 {strides = array<i32>} : memref<8x128xf32, #tpu.memory_space<vmem>>, vector<8x128xf32>,
    return
  }
}

</mosaic_0001>

<bundles_post_ra>
// kernel: tpu_custom_call.1
= control target key start
LH: loop header
LB: loop body
LE: loop exit
PB: predicated region body
PF: predicated region fallthrough
CT: control target
= control target key end

     0   :  { %8 = vsyncpa [#allocation3], 0  ;;  %s720_s0 = inlined_call_operand.hbm [shape: f32[8,32], index: 0, kind: input, shape index: {}]   ;;  %s721_s1 = inlined_call_operand.hbm [shape: f32[288,128], index: 1, kind: input, shape index: {}]   ;;  %s722_s2 = inlined_call_operand.hbm [shape: f32[8,128], index: 2, kind: input, shape index: {}]   ;;  %s723_s3 = inlined_call_operand.hbm [shape: f32[8,128], index: 3, kind: output, shape index: {}]  }
   0x1   :  { %9 = vsyncpa [#allocation6], 0 }
   0x2   :  { %10 = vsyncpa [#allocation4], 0  ;;  %s622_s12 = smov [#allocation5]   ;;  %s528_s16 = scalar_lea.hbm %s721_s1, 4608 }
   0x3   :  { %s26_s13 = sshll.u32 %s622_s12, 4  ;;  %p529_p0 = scmp.ne.s32.totalorder %s721_s1, %s528_s16  ;;  %s27_s13 = int_to_ptr.vmem [resolvable:$true] %s26_s13 }
   0x4   :  { %p532_p1 = scmp.lt.u32.totalorder %s528_s16, %s721_s1 }
   0x6   :  { %p534_p2 = pnand %p532_p1, %p529_p0 }
   0x8   :  { %537 = shalt.err (!%p534_p2)
}
   0x9   :  { %s538_s21 = scalar_lea.vmem %s27_s13, 4608  ;;  %p543_p4 = scmp.lt.s32.totalorder %s27_s13, %s27_s13 }
   0xa   :  { %p539_p3 = scmp.ne.s32.totalorder %s27_s13, %s538_s21  ;;  %p544_p5 = scmp.lt.s32.totalorder %s538_s21, %s538_s21 }
   0xc   :  { %p545_p6 = por %p544_p5, %p543_p4 }
   0xe   :  { %p546_p7 = pnand %p545_p6, %p539_p3 }
  0x10   :  { %549 = shalt.err (!%p546_p7)
}
  0x11   :  { %s623_s22 = smov 128   ;;  %s624_s23 = smov 8  }
  0x12   :  { %32 = dma.hbm_to_vmem [thread:$0]  %s721_s1, 4608, %s27_s13, [#allocation6], %s623_s22, %s623_s22, %s624_s23  }
  0x13   :  { %s625_s26 = smov [#allocation2]   ;;  %s626_s28 = smov [#allocation7]  }
  0x14   :  { %s17_s27 = sshll.u32 %s625_s26, 4  ;;  %s39_s29 = sshll.u32 %s626_s28, 4  ;;  %s18_s27 = int_to_ptr.vmem [resolvable:$true] %s17_s27  ;;  %s40_s29 = int_to_ptr.vmem [resolvable:$true] %s39_s29 }
  0x15   :  { %s550_s5 = scalar_lea.hbm %s720_s0, 128 }
  0x16   :  { %p551_p8 = scmp.ne.s32.totalorder %s720_s0, %s550_s5  ;;  %p554_p9 = scmp.lt.u32.totalorder %s550_s5, %s720_s0 }
  0x18   :  { %p556_p10 = pnand %p554_p9, %p551_p8 }
  0x1a   :  { %559 = shalt.err (!%p556_p10)
}
  0x1b   :  { %s560_s1 = scalar_lea.vmem %s18_s27, 128  ;;  %p565_p12 = scmp.lt.s32.totalorder %s18_s27, %s18_s27 }
  0x1c   :  { %p561_p11 = scmp.ne.s32.totalorder %s18_s27, %s560_s1  ;;  %p566_p13 = scmp.lt.s32.totalorder %s560_s1, %s560_s1 }
  0x1e   :  { %p567_p0 = por %p566_p13, %p565_p12 }
  0x20   :  { %p568_p1 = pnand %p567_p0, %p561_p11 }
  0x22   :  { %571 = shalt.err (!%p568_p1)
}
  0x23   :  { %20 = dma.hbm_to_vmem [thread:$0]  %s720_s0, 128, %s18_s27, [#allocation3]  }
  0x24   :  { %s572_s14 = scalar_lea.hbm %s722_s2, 128 }
  0x25   :  { %p573_p2 = scmp.ne.s32.totalorder %s722_s2, %s572_s14  ;;  %p576_p3 = scmp.lt.u32.totalorder %s572_s14, %s722_s2 }
  0x27   :  { %p578_p4 = pnand %p576_p3, %p573_p2 }
  0x29   :  { %581 = shalt.err (!%p578_p4)
}
  0x2a   :  { %s582_s19 = scalar_lea.vmem %s40_s29, 128  ;;  %p587_p6 = scmp.lt.s32.totalorder %s40_s29, %s40_s29 }
  0x2b   :  { %p583_p5 = scmp.ne.s32.totalorder %s40_s29, %s582_s19  ;;  %p588_p7 = scmp.lt.s32.totalorder %s582_s19, %s582_s19 }
  0x2d   :  { %p589_p8 = por %p588_p7, %p587_p6 }
  0x2f   :  { %p590_p9 = pnand %p589_p8, %p583_p5 }
  0x31   :  { %593 = shalt.err (!%p590_p9)
}
  0x32   :  { %42 = dma.hbm_to_vmem [thread:$0]  %s722_s2, 128, %s40_s29, [#allocation6]  }
  0x33   :  { %616 = dma.done.wait [#allocation3], 128  }
  0x34   :  { %617 = vsyncadd [#allocation3], 4294967168 }
  0x35   :  { %618 = dma.done.wait [#allocation6], 4736  }
  0x36   :  { %619 = vsyncadd [#allocation6], 4294962560  ;;  %v627_v0 = vmov 0.0|0.0   ;;  %vm628_vm0 = vmmov 0   ;;  %v629_v1 = vmov 0.0   ;;  %v53_v2 = vld [vmem:[#allocation5] sm:$0xff] }
  0x37   :  { %461 = vmatprep.subr.bf16.mxu0 %v627_v0  ;;  %388 = vmatprep.mubr.msk.f32.mxu0 %vm628_vm0, %v629_v1  ;;  %v54_v3 = vld [vmem:[#allocation5 + $0x8] sm:$0xff]  ;;  %v55_v4 = vld [vmem:[#allocation5 + $0x10] sm:$0xff]  ;;  %v56_v6 = vld [vmem:[#allocation5 + $0x18] sm:$0xff]  ;;  %vm62_vm1 = vcmask 261120   ;;  %s630_s2 = smov [#allocation8]  }
  0x38   :  { %467 = vmatprep.subr.bf16.mxu1 %v627_v0  ;;  %423 = vmatprep.mubr.msk.f32.mxu1 %vm628_vm0, %v629_v1  ;;  %v462_v5 = vpack.c.bf16 %v54_v3, %v53_v2  ;;  %v137_v7 = vld [vmem:[#allocation5 + $0x20] sm:$0xff]  ;;  %v138_v8 = vld [vmem:[#allocation5 + $0x28] sm:$0xff]  ;;  %v139_v9 = vld [vmem:[#allocation5 + $0x30] sm:$0xff]  ;;  %v465_v11 = vpack.c.bf16 %v56_v6, %v55_v4  ;;  %s327_s21 = sshll.u32 %s630_s2, 4  ;;  %s328_s21 = int_to_ptr.vmem [resolvable:$true] %s327_s21 }
  0x39   :  { %v140_v10 = vld [vmem:[#allocation5 + $0x38] sm:$0xff]  ;;  %v468_v12 = vpack.c.bf16 %v138_v8, %v137_v7  ;;  %v141_v14 = vld [vmem:[#allocation5 + $0x40] sm:$0xff]  ;;  %v142_v15 = vld [vmem:[#allocation5 + $0x48] sm:$0xff]  ;;  %s594_s22 = scalar_lea.vmem %s328_s21, 128  ;;  %p599_p11 = scmp.lt.s32.totalorder %s328_s21, %s328_s21 }
  0x3a   :  { %463 = vmatpush3.bf16.msra.mxu0 %v462_v5  ;;  %v471_v13 = vpack.c.bf16 %v140_v10, %v139_v9  ;;  %v52_v16 = vld [vmem:[#allocation2] sm:$0xff]  ;;  %v474_v17 = vpack.c.bf16 %v142_v15, %v141_v14  ;;  %v143_v18 = vld [vmem:[#allocation5 + $0x50] sm:$0xff]  ;;  %v145_v21 = vld [vmem:[#allocation5 + $0x60] sm:$0xff]  ;;  %p595_p10 = scmp.ne.s32.totalorder %s328_s21, %s594_s22  ;;  %p600_p12 = scmp.lt.s32.totalorder %s594_s22, %s594_s22 }
  0x3b   :  { %464 = vmatprep.subr.bf16.mxu0 %v627_v0  ;;  %469 = vmatpush3.bf16.msra.mxu1 %v468_v12  ;;  %v144_v19 = vld [vmem:[#allocation5 + $0x58] sm:$0xff]  ;;  %v146_v22 = vld [vmem:[#allocation5 + $0x68] sm:$0xff]  ;;  %v147_v24 = vld [vmem:[#allocation5 + $0x70] sm:$0xff] }
  0x3c   :  { %470 = vmatprep.subr.bf16.mxu1 %v627_v0  ;;  %v477_v20 = vpack.c.bf16 %v144_v19, %v143_v18  ;;  %v480_v23 = vpack.c.bf16 %v146_v22, %v145_v21  ;;  %v148_v25 = vld [vmem:[#allocation5 + $0x78] sm:$0xff]  ;;  %v149_v27 = vld [vmem:[#allocation5 + $0x80] sm:$0xff]  ;;  %v150_v28 = vld [vmem:[#allocation5 + $0x88] sm:$0xff]  ;;  %p601_p13 = por %p600_p12, %p599_p11 }
  0x3d   :  { %v483_v26 = vpack.c.bf16 %v148_v25, %v147_v24  ;;  %v486_v29 = vpack.c.bf16 %v150_v28, %v149_v27  ;;  %v151_v30 = vld [vmem:[#allocation5 + $0x90] sm:$0xff]  ;;  %v152_v31 = vld [vmem:[#allocation5 + $0x98] sm:$0xff]  ;;  %v229_v33 = vld [vmem:[#allocation5 + $0xa0] sm:$0xff] }
  0x3e   :  { %466 = vmatpush3.bf16.msra.mxu0 %v465_v11  ;;  %v489_v32 = vpack.c.bf16 %v152_v31, %v151_v30  ;;  %v230_v34 = vld [vmem:[#allocation5 + $0xa8] sm:$0xff]  ;;  %v231_v35 = vld [vmem:[#allocation5 + $0xb0] sm:$0xff]  ;;  %v232_v37 = vld [vmem:[#allocation5 + $0xb8] sm:$0xff]  ;;  %p602_p0 = pnand %p601_p13, %p595_p10 }
  0x3f   :  { %491 = vmatprep.subr.bf16.mxu0 %v627_v0  ;;  %472 = vmatpush3.bf16.msra.mxu1 %v471_v13  ;;  %v492_v36 = vpack.c.bf16 %v230_v34, %v229_v33  ;;  %v495_v38 = vpack.c.bf16 %v232_v37, %v231_v35  ;;  %v233_v39 = vld [vmem:[#allocation5 + $0xc0] sm:$0xff]  ;;  %v234_v40 = vld [vmem:[#allocation5 + $0xc8] sm:$0xff]  ;;  %v235_v42 = vld [vmem:[#allocation5 + $0xd0] sm:$0xff] }
  0x40   :  { %473 = vmatprep.subr.bf16.mxu1 %v627_v0  ;;  %v498_v41 = vpack.c.bf16 %v234_v40, %v233_v39  ;;  %v236_v43 = vld [vmem:[#allocation5 + $0xd8] sm:$0xff]  ;;  %v237_v45 = vld [vmem:[#allocation5 + $0xe0] sm:$0xff]  ;;  %v238_v46 = vld [vmem:[#allocation5 + $0xe8] sm:$0xff] }
  0x41   :  { %389 = vmatmul.mubr.msk.f32.vlgmr.msra.gmra.mrb[0].mxu0 %vm62_vm1, %v52_v16  ;;  %v501_v44 = vpack.c.bf16 %v236_v43, %v235_v42  ;;  %v504_v47 = vpack.c.bf16 %v238_v46, %v237_v45  ;;  %v337_v48 = vld [vmem:[#allocation7] ss:$0 sm:$0xff]  ;;  %v239_v53 = vld [vmem:[#allocation5 + $0xf0] sm:$0xff]  ;;  %v240_v54 = vld [vmem:[#allocation5 + $0xf8] sm:$0xff] }
  0x42   :  { %458 = vmatprep.mubr.msk.f32.mxu0 %vm628_vm0, %v629_v1  ;;  %493 = vmatpush3.bf16.msra.mxu0 %v492_v36  ;;  %v507_v55 = vpack.c.bf16 %v240_v54, %v239_v53  ;;  %v241_v56 = vld [vmem:[#allocation5 + $0x100] sm:$0xff]  ;;  %v242_v57 = vld [vmem:[#allocation5 + $0x108] sm:$0xff]  ;;  %v243_v59 = vld [vmem:[#allocation5 + $0x110] sm:$0xff] }
  0x43   :  { %475 = vmatpush3.bf16.msra.mxu1 %v474_v17  ;;  %494 = vmatprep.subr.bf16.mxu0 %v627_v0  ;;  %v510_v58 = vpack.c.bf16 %v242_v57, %v241_v56  ;;  %v244_v60 = vld [vmem:[#allocation5 + $0x118] sm:$0xff]  ;;  %v339_v62 = vld [vmem:[#allocation7 + $0x1] ss:$0 sm:$0xff]  ;;  %v340_v4 = vld [vmem:[#allocation7 + $0x2] ss:$0 sm:$0xff] }
  0x44   :  { %476 = vmatprep.subr.bf16.mxu1 %v627_v0  ;;  %v513_v61 = vpack.c.bf16 %v244_v60, %v243_v59 }
  0x46   :  { %496 = vmatpush3.bf16.msra.mxu0 %v495_v38 }
  0x47   :  { %478 = vmatpush3.bf16.msra.mxu1 %v477_v20  ;;  %497 = vmatprep.subr.bf16.mxu0 %v627_v0 }
  0x48   :  { %479 = vmatprep.subr.bf16.mxu1 %v627_v0 }
  0x4a   :  { %499 = vmatpush3.bf16.msra.mxu0 %v498_v41 }
  0x4b   :  { %481 = vmatpush3.bf16.msra.mxu1 %v480_v23  ;;  %500 = vmatprep.subr.bf16.mxu0 %v627_v0 }
  0x4c   :  { %482 = vmatprep.subr.bf16.mxu1 %v627_v0 }
  0x4e   :  { %502 = vmatpush3.bf16.msra.mxu0 %v501_v44 }
  0x4f   :  { %484 = vmatpush3.bf16.msra.mxu1 %v483_v26  ;;  %503 = vmatprep.subr.bf16.mxu0 %v627_v0 }
  0x50   :  { %485 = vmatprep.subr.bf16.mxu1 %v627_v0 }
  0x52   :  { %505 = vmatpush3.bf16.msra.mxu0 %v504_v47 }
  0x53   :  { %487 = vmatpush3.bf16.msra.mxu1 %v486_v29  ;;  %506 = vmatprep.subr.bf16.mxu0 %v627_v0 }
  0x54   :  { %488 = vmatprep.subr.bf16.mxu1 %v627_v0 }
  0x56   :  { %508 = vmatpush3.bf16.msra.mxu0 %v507_v55 }
  0x57   :  { %490 = vmatpush3.bf16.msra.mxu1 %v489_v32  ;;  %509 = vmatprep.subr.bf16.mxu0 %v627_v0 }
  0x5a   :  { %511 = vmatpush3.bf16.msra.mxu0 %v510_v58 }
  0x5b   :  { %512 = vmatprep.subr.bf16.mxu0 %v627_v0 }
  0x5e   :  { %514 = vmatpush3.bf16.msra.mxu0 %v513_v61 }
 0x114   :  { %v132_v49 = vpop.f32.mrb[0].mxu0 }
 0x115   :  { %v133_v50 = vadd.f32 %v337_v48, %v132_v49  ;;  %v390_v51 = vpop.f32.mrb[1].mxu0 }
 0x117   :  { %524 = vtanh.f32 %v133_v50 }
 0x121   :  { %v525_v52 = vpop.eup %524 }
 0x122   :  { %424 = vmatmul.mubr.f32.vlgmr.msra.gmra.mrb[0].mxu1 %v525_v52 }
 0x1f5   :  { %v224_v63 = vpop.f32.mrb[0].mxu1 }
 0x1f6   :  { %v225_v1 = vadd.f32 %v339_v62, %v224_v63  ;;  %v425_v2 = vpop.f32.mrb[1].mxu1 }
 0x1f8   :  { %526 = vtanh.f32 %v225_v1 }
 0x202   :  { %v527_v3 = vpop.eup %526 }
 0x203   :  { %459 = vmatmul.mubr.f32.vlgmr.msra.gmra.mrb[2].mxu0 %v527_v3 }
 0x2d6   :  { %v316_v5 = vpop.f32.mrb[2].mxu0 }
 0x2d7   :  { %v317_v6 = vadd.f32 %v340_v4, %v316_v5  ;;  %v460_v7 = vpop.f32.mrb[3].mxu0 }
 0x2d9   :  { %320 = vst [vmem:[#allocation8] sm:$0xff] %v317_v6 }
 0x2da   :  { %605 = shalt.err (!%p602_p0)
}
 0x2db   :  { %s606_s25 = scalar_lea.hbm %s723_s3, 128 }
 0x2dc   :  { %p607_p1 = scmp.ne.s32.totalorder %s723_s3, %s606_s25  ;;  %p610_p2 = scmp.lt.u32.totalorder %s606_s25, %s723_s3 }
 0x2de   :  { %p612_p3 = pnand %p610_p2, %p607_p1 }
 0x2e0   :  { %615 = shalt.err (!%p612_p3)
}
 0x2e1   :  { %330 = dma.vmem_to_hbm [thread:$0]  %s328_s21, 128, %s723_s3, [#allocation4]  }
 0x2e2   :  { %620 = dma.done.wait [#allocation4], 128  }
 0x2e3   :  { %621 = vsyncadd [#allocation4], 4294967168 }
 0x2e4   :  { %334 = vsyncpa [#allocation3], 1 }
 0x2e5   :  { %335 = vsyncpa [#allocation6], 1 }
 0x2e6   :  { %336 = vsyncpa [#allocation4], 1 }

</bundles_post_ra>
